<compile_context>
chip_gen: v5e
topology: v5e:2x2
jax: 0.10.0
libtpu: 0.0.40
codegen_flags: <defaults>
</compile_context>

<pallas_src>
import functools

import jax
import jax.numpy as jnp
from jax.experimental import pallas as pl
from jax.experimental.pallas import tpu as pltpu


# ----------------------------- kernel ---------------------------------------


def _mha_kernel(x_ref, *refs, head_dim, heads_per_group, has_mask,
                mask_batch_dep, mask_head_dep, acc_into_out):
    # Refs (per grid step (bb, g)):
    #   x_ref:     (Bblk, L, C)      f32, resident across the group axis
    #   mask_ref:  (Bblk|1, G|1, L, L) f32 additive mask   (only when has_mask)
    #   wq_ref:    (1, C, G*hd)      bf16 (scale pre-folded)
    #   wk_ref:    (1, C, G*hd)      bf16
    #   wv_ref:    (1, C, G*hd)      bf16
    #   wproj_ref: (G, hd, C)        bf16, per-head rows of the output proj
    #   bias_ref:  (1, C)            f32 projection bias
    #   o_ref:     (Bblk, L, C)      output block, resident across the group axis
    #   acc_ref:   (Bblk, L, C)      f32 scratch (only when not acc_into_out)
    if has_mask:
        mask_ref = refs[0]
        refs = refs[1:]
    else:
        mask_ref = None
    wq_ref, wk_ref, wv_ref, wproj_ref, bias_ref, o_ref = refs[:6]
    acc_ref = o_ref if acc_into_out else refs[6]

    g = pl.program_id(1)
    hd = head_dim
    G = heads_per_group
    Bblk = x_ref.shape[0]

    @pl.when(g == 0)
    def _init():
        # Initialize the head-group accumulator with the projection bias
        # (applied exactly once).
        bias = bias_ref[...]                                  # (1, C) f32
        acc_ref[...] = jnp.zeros(acc_ref.shape, acc_ref.dtype) + bias[None]

    wq = wq_ref[0]                                            # (C, G*hd) bf16
    wk = wk_ref[0]
    wv = wv_ref[0]

    for bi in range(Bblk):                                    # static unroll
        x = x_ref[bi].astype(jnp.bfloat16)                    # (L, C), cast in-VMEM

        # Grouped QKV projections: three clean MXU matmuls (N = G*hd).
        q = jnp.dot(x, wq, preferred_element_type=jnp.float32)   # (L, G*hd) (scaled)
        k = jnp.dot(x, wk, preferred_element_type=jnp.float32)
        v = jnp.dot(x, wv, preferred_element_type=jnp.float32).astype(jnp.bfloat16)

        contrib = None
        for h in range(G):                                    # static unroll
            sl = slice(h * hd, (h + 1) * hd)
            qh = q[:, sl].astype(jnp.bfloat16)                # (L, hd)
            kh = k[:, sl].astype(jnp.bfloat16)                # (L, hd)
            # q @ k^T without materializing a transpose (contract head_dim).
            s = jax.lax.dot_general(qh, kh, (((1,), (1,)), ((), ())),
                                    preferred_element_type=jnp.float32)  # (L, L)
            if has_mask:
                m = mask_ref[bi if mask_batch_dep else 0,
                             h if mask_head_dep else 0]       # (L, L) f32
                s = s + m

            # Numerically stable softmax, all in f32; reciprocal on the EUP.
            s = s - jnp.max(s, axis=-1, keepdims=True)
            p = jnp.exp(s)
            p = p * pl.reciprocal(jnp.sum(p, axis=-1, keepdims=True), approx=True)

            ctx = jnp.dot(p.astype(jnp.bfloat16), v[:, sl],
                          preferred_element_type=jnp.float32)             # (L, hd)
            # Per-head slice of the output projection; summing over heads
            # (and over groups via the resident accumulator) == full proj.
            part = jnp.dot(ctx.astype(jnp.bfloat16), wproj_ref[h],
                           preferred_element_type=jnp.float32)            # (L, C)
            contrib = part if contrib is None else contrib + part

        acc_ref[bi] = acc_ref[bi] + contrib.astype(acc_ref.dtype)

    if not acc_into_out:
        @pl.when(g == pl.num_programs(1) - 1)
        def _finalize():
            o_ref[...] = acc_ref[...].astype(o_ref.dtype)


# ----------------------------- wrapper --------------------------------------


def _pick_head_group(num_heads, head_dim, lane_target=256):
    """Smallest divisor of num_heads whose grouped width reaches the MXU tile."""
    for d in range(1, num_heads + 1):
        if num_heads % d == 0 and d * head_dim >= lane_target:
            return d
    return num_heads


def _pick_batch_block(batch, cap=8):
    """Amortize weight DMA over batches while keeping >= 2 parallel grid blocks
    (so v7x's two TensorCores both get work)."""
    limit = min(cap, max(1, batch // 2))
    best = 1
    for d in range(1, limit + 1):
        if batch % d == 0:
            best = d
    return best


def _vmem_limit_bytes():
    """Raise the scoped-VMEM limit toward physical capacity (defaults of
    16/32 MiB are the binding constraint, not physical VMEM)."""
    try:
        cap = pltpu.get_tpu_info().vmem_capacity_bytes
        return min(int(cap) * 3 // 4, 64 * 1024 * 1024)
    except Exception:
        return None


def prepare_attention_params(w_qkv, w_proj, b_proj, num_heads, *, heads_per_group=None):
    """One-time weight preprocessing (hoisted out of the hot path).

    w_qkv:  (C, 3C), y = x @ w_qkv. Columns follow PyTorch's
            reshape(B, L, 3, H, hd) layout, i.e. [q-heads | k-heads | v-heads].
    w_proj: (C, C),  y = ctx @ w_proj + b_proj.
    """
    C = w_proj.shape[0]
    assert C % num_heads == 0
    hd = C // num_heads
    scale = float(hd) ** (-0.5)
    G = heads_per_group or _pick_head_group(num_heads, hd)
    assert num_heads % G == 0
    ng = num_heads // G

    w_q = w_qkv[:, 0:C] * scale          # fold softmax scale into q weights (free)
    w_k = w_qkv[:, C:2 * C]
    w_v = w_qkv[:, 2 * C:3 * C]

    def group(w):                        # (C, C) -> (ng, C, G*hd), bf16
        return w.reshape(C, ng, G * hd).transpose(1, 0, 2).astype(jnp.bfloat16)

    return dict(
        wq=group(w_q), wk=group(w_k), wv=group(w_v),
        wproj=w_proj.reshape(num_heads, hd, C).astype(jnp.bfloat16),
        bias=b_proj.reshape(1, C).astype(jnp.float32),
        num_heads=num_heads, head_dim=hd, heads_per_group=G, num_groups=ng,
    )


def attention_forward(x, params, attention_mask=None, *, batch_block=None):
    """x: (B, L, C).  params: output of prepare_attention_params."""
    B, L, C = x.shape
    H = params["num_heads"]
    hd = params["head_dim"]
    G = params["heads_per_group"]
    ng = params["num_groups"]
    assert C == H * hd
    out_dtype = x.dtype
    acc_into_out = out_dtype == jnp.float32     # accumulate directly into o_ref

    Bblk = batch_block or _pick_batch_block(B)
    assert B % Bblk == 0

    in_specs = [pl.BlockSpec((Bblk, L, C), lambda bb, g: (bb, 0, 0))]   # x
    inputs = [x]

    has_mask = attention_mask is not None
    mb = mh = False
    if has_mask:
        mask = jnp.asarray(attention_mask, dtype=jnp.float32)
        assert mask.ndim <= 4
        mask = mask.reshape((1,) * (4 - mask.ndim) + mask.shape)   # (Bm, Hm, L, L)
        assert mask.shape[-2:] == (L, L)
        assert mask.shape[0] in (1, B) and mask.shape[1] in (1, H)
        mb = mask.shape[0] > 1    # batch-dependent mask?
        mh = mask.shape[1] > 1    # head-dependent mask?
        in_specs.append(pl.BlockSpec(
            (Bblk if mb else 1, G if mh else 1, L, L),
            lambda bb, g: (bb if mb else 0, g if mh else 0, 0, 0)))
        inputs.append(mask)

    in_specs += [
        pl.BlockSpec((1, C, G * hd), lambda bb, g: (g, 0, 0)),   # W_q group
        pl.BlockSpec((1, C, G * hd), lambda bb, g: (g, 0, 0)),   # W_k group
        pl.BlockSpec((1, C, G * hd), lambda bb, g: (g, 0, 0)),   # W_v group
        pl.BlockSpec((G, hd, C), lambda bb, g: (g, 0, 0)),       # W_proj rows (group)
        pl.BlockSpec((1, C), lambda bb, g: (0, 0)),              # proj bias
    ]
    inputs += [params["wq"], params["wk"], params["wv"], params["wproj"], params["bias"]]

    kernel = functools.partial(
        _mha_kernel, head_dim=hd, heads_per_group=G, has_mask=has_mask,
        mask_batch_dep=mb, mask_head_dep=mh, acc_into_out=acc_into_out)

    scratch = [] if acc_into_out else [pltpu.VMEM((Bblk, L, C), jnp.float32)]

    cp_kwargs = dict(dimension_semantics=("parallel", "arbitrary"))
    vmem_limit = _vmem_limit_bytes()
    if vmem_limit is not None:
        cp_kwargs["vmem_limit_bytes"] = vmem_limit

    return pl.pallas_call(
        kernel,
        out_shape=jax.ShapeDtypeStruct((B, L, C), out_dtype),
        grid_spec=pltpu.PrefetchScalarGridSpec(
            num_scalar_prefetch=0,
            grid=(B // Bblk, ng),                  # (batch blocks, head groups)
            in_specs=in_specs,
            out_specs=pl.BlockSpec((Bblk, L, C), lambda bb, g: (bb, 0, 0)),
            scratch_shapes=scratch,
        ),
        compiler_params=pltpu.CompilerParams(**cp_kwargs),
    )(*inputs)


def attention_layer(x, w_qkv, w_proj, b_proj, num_heads, attention_mask=None):
    """Convenience wrapper with the original signature."""
    params = prepare_attention_params(w_qkv, w_proj, b_proj, num_heads)
    return attention_forward(x, params, attention_mask)


# ----------------------------- reference & test -----------------------------


def _reference(x, w_qkv, w_proj, b_proj, num_heads, attention_mask=None):
    """Pure-JAX (f32) reference mirroring the PyTorch forward."""
    B, L, C = x.shape
    head_dim = C // num_heads
    scale = head_dim ** (-0.5)
    qkv = x @ w_qkv                                           # (B, L, 3C)
    qkv = qkv.reshape(B, L, 3, num_heads, head_dim)
    qkv = jnp.transpose(qkv, (2, 0, 3, 1, 4))                 # (3, B, H, L, hd)
    q, k, v = qkv[0], qkv[1], qkv[2]
    attn = jnp.einsum('bhqd,bhkd->bhqk', q, k) * scale
    if attention_mask is not None:
        attn = attn + attention_mask
    attn = jax.nn.softmax(attn, axis=-1)
    out = jnp.einsum('bhqk,bhkd->bhqd', attn, v)              # (B, H, L, hd)
    out = jnp.transpose(out, (0, 2, 1, 3)).reshape(B, L, C)
    return out @ w_proj + b_proj


if __name__ == "__main__":
    B, L, C, H = 2, 8, 32, 8

    key = jax.random.PRNGKey(0)
    kx, kq, kp, kb = jax.random.split(key, 4)

    x = jax.random.normal(kx, (B, L, C), dtype=jnp.float32)
    # Deterministic parameter init (qkv_bias=False -> no qkv bias; proj has bias).
    w_qkv = jax.random.normal(kq, (C, 3 * C), dtype=jnp.float32) * 0.1
    w_proj = jax.random.normal(kp, (C, C), dtype=jnp.float32) * 0.1
    b_proj = jax.random.normal(kb, (C,), dtype=jnp.float32) * 0.1

    # One-time weight preprocessing (hoisted out of the hot path).
    params = prepare_attention_params(w_qkv, w_proj, b_proj, num_heads=H)

    # No-mask path (specialized kernel: no mask operand, no add).
    out = jax.block_until_ready(attention_forward(x, params))
    ref = _reference(x, w_qkv, w_proj, b_proj, H)
    assert out.shape == (B, L, C)
    assert jnp.allclose(out, ref, atol=2e-2, rtol=2e-2), "no-mask mismatch vs reference"

    # Masked path (additive causal mask, shared across batch & heads).
    causal = jnp.where(jnp.tril(jnp.ones((L, L), dtype=bool)), 0.0, -1e9).astype(jnp.float32)
    out_m = jax.block_until_ready(attention_forward(x, params, attention_mask=causal))
    ref_m = _reference(x, w_qkv, w_proj, b_proj, H, attention_mask=causal)
    assert jnp.allclose(out_m, ref_m, atol=2e-2, rtol=2e-2), "masked mismatch vs reference"

    print("KERNEL_OK")
</pallas_src>

<mosaic_0001>
module attributes {stable_mosaic.version = 11 : i64} {
  func.func @_mha_kernel(%arg0: i32, %arg1: i32, %arg2: memref<1x8x32xf32, #tpu.memory_space<vmem>>, %arg3: memref<1x32x32xbf16, #tpu.memory_space<vmem>>, %arg4: memref<1x32x32xbf16, #tpu.memory_space<vmem>>, %arg5: memref<1x32x32xbf16, #tpu.memory_space<vmem>>, %arg6: memref<8x4x32xbf16, #tpu.memory_space<vmem>>, %arg7: memref<1x32xf32, #tpu.memory_space<vmem>>, %arg8: memref<1x8x32xf32, #tpu.memory_space<vmem>>) attributes {dimension_semantics = [#tpu.dimension_semantics<parallel>, #tpu.dimension_semantics<arbitrary>], iteration_bounds = array<i64: 2, 1>, scalar_prefetch = 0 : i64, scratch_operands = 0 : i64, tpu.core_type = #tpu.core_type<tc>, window_params = [{transform_indices = @transform_0, window_bounds = array<i64: 1, 8, 32>}, {transform_indices = @transform_1, window_bounds = array<i64: 1, 32, 32>}, {transform_indices = @transform_2, window_bounds = array<i64: 1, 32, 32>}, {transform_indices = @transform_3, window_bounds = array<i64: 1, 32, 32>}, {transform_indices = @transform_4, window_bounds = array<i64: 8, 4, 32>}, {pipeline_mode = #tpu.pipeline_mode<synchronous>, transform_indices = @transform_5, window_bounds = array<i64: 1, 32>}, {transform_indices = @transform_6, window_bounds = array<i64: 1, 8, 32>}]} {
    %c0_i32 = arith.constant 0 : i32
    %0 = arith.cmpi eq, %arg1, %c0_i32 : i32
    %1 = arith.extui %0 : i1 to i32
    %c0_i32_0 = arith.constant 0 : i32
    %2 = arith.cmpi ne, %1, %c0_i32_0 : i32
    scf.if %2 {
      %c0_77 = arith.constant 0 : index
      %c0_78 = arith.constant 0 : index
      %205 = vector.load %arg7[%c0_77, %c0_78] : memref<1x32xf32, #tpu.memory_space<vmem>>, vector<1x32xf32>
      %cst_79 = arith.constant 0.000000e+00 : f32
      %206 = vector.broadcast %cst_79 : f32 to vector<1x8x32xf32>
      %207 = vector.shape_cast %205 : vector<1x32xf32> to vector<1x1x32xf32>
      %208 = vector.broadcast %207 : vector<1x1x32xf32> to vector<1x8x32xf32>
      %209 = arith.addf %206, %208 : vector<1x8x32xf32>
      %c0_80 = arith.constant 0 : index
      %c0_81 = arith.constant 0 : index
      %c0_82 = arith.constant 0 : index
      %210 = vector.load %arg8[%c0_80, %c0_81, %c0_82] : memref<1x8x32xf32, #tpu.memory_space<vmem>>, vector<1x8x32xf32>
      tpu.vector_store %arg8[%c0_80, %c0_81, %c0_82], %209 {strides = array<i32>} : memref<1x8x32xf32, #tpu.memory_space<vmem>>, vector<1x8x32xf32>,
    } else {
    }
    %c0 = arith.constant 0 : index
    %c0_1 = arith.constant 0 : index
    %c0_2 = arith.constant 0 : index
    %3 = vector.load %arg3[%c0, %c0_1, %c0_2] : memref<1x32x32xbf16, #tpu.memory_space<vmem>>, vector<1x32x32xbf16>
    %4 = vector.shape_cast %3 : vector<1x32x32xbf16> to vector<32x32xbf16>
    %c0_3 = arith.constant 0 : index
    %c0_4 = arith.constant 0 : index
    %c0_5 = arith.constant 0 : index
    %5 = vector.load %arg4[%c0_3, %c0_4, %c0_5] : memref<1x32x32xbf16, #tpu.memory_space<vmem>>, vector<1x32x32xbf16>
    %6 = vector.shape_cast %5 : vector<1x32x32xbf16> to vector<32x32xbf16>
    %c0_6 = arith.constant 0 : index
    %c0_7 = arith.constant 0 : index
    %c0_8 = arith.constant 0 : index
    %7 = vector.load %arg5[%c0_6, %c0_7, %c0_8] : memref<1x32x32xbf16, #tpu.memory_space<vmem>>, vector<1x32x32xbf16>
    %8 = vector.shape_cast %7 : vector<1x32x32xbf16> to vector<32x32xbf16>
    %c0_9 = arith.constant 0 : index
    %c0_10 = arith.constant 0 : index
    %c0_11 = arith.constant 0 : index
    %9 = vector.load %arg2[%c0_9, %c0_10, %c0_11] : memref<1x8x32xf32, #tpu.memory_space<vmem>>, vector<1x8x32xf32>
    %10 = vector.shape_cast %9 : vector<1x8x32xf32> to vector<8x32xf32>
    %11 = arith.truncf %10 : vector<8x32xf32> to vector<8x32xbf16>
    %cst = arith.constant dense<0.000000e+00> : vector<8x32xf32>
    %12 = tpu.matmul %11, %4, %cst {dimension_numbers = #tpu.dot_dimension_numbers<[1], [0], [0], [1], [0, 0, 1, 1], [], []>} : vector<8x32xbf16>, vector<32x32xbf16>, vector<8x32xf32> -> vector<8x32xf32>
    %cst_12 = arith.constant dense<0.000000e+00> : vector<8x32xf32>
    %13 = tpu.matmul %11, %6, %cst_12 {dimension_numbers = #tpu.dot_dimension_numbers<[1], [0], [0], [1], [0, 0, 1, 1], [], []>} : vector<8x32xbf16>, vector<32x32xbf16>, vector<8x32xf32> -> vector<8x32xf32>
    %cst_13 = arith.constant dense<0.000000e+00> : vector<8x32xf32>
    %14 = tpu.matmul %11, %8, %cst_13 {dimension_numbers = #tpu.dot_dimension_numbers<[1], [0], [0], [1], [0, 0, 1, 1], [], []>} : vector<8x32xbf16>, vector<32x32xbf16>, vector<8x32xf32> -> vector<8x32xf32>
    %15 = arith.truncf %14 : vector<8x32xf32> to vector<8x32xbf16>
    %16 = vector.extract_strided_slice %12 {offsets = [0, 0], sizes = [8, 4], strides = [1, 1]} : vector<8x32xf32> to vector<8x4xf32>
    %17 = arith.truncf %16 : vector<8x4xf32> to vector<8x4xbf16>
    %18 = vector.extract_strided_slice %13 {offsets = [0, 0], sizes = [8, 4], strides = [1, 1]} : vector<8x32xf32> to vector<8x4xf32>
    %19 = arith.truncf %18 : vector<8x4xf32> to vector<8x4xbf16>
    %cst_14 = arith.constant dense<0.000000e+00> : vector<8x8xf32>
    %20 = tpu.matmul %17, %19, %cst_14 {dimension_numbers = #tpu.dot_dimension_numbers<[1], [1], [0], [0], [0, 0, 1, 0], [], []>} : vector<8x4xbf16>, vector<8x4xbf16>, vector<8x8xf32> -> vector<8x8xf32>
    %cst_15 = arith.constant dense<0xFF800000> : vector<8xf32>
    %21 = vector.multi_reduction <maximumf>, %20, %cst_15 [1] : vector<8x8xf32> to vector<8xf32>
    %22 = vector.shape_cast %21 : vector<8xf32> to vector<8x1xf32>
    %23 = vector.broadcast %22 : vector<8x1xf32> to vector<8x8xf32>
    %24 = arith.subf %20, %23 : vector<8x8xf32>
    %25 = math.exp %24 : vector<8x8xf32>
    %cst_16 = arith.constant dense<0.000000e+00> : vector<8xf32>
    %26 = vector.multi_reduction <add>, %25, %cst_16 [1] : vector<8x8xf32> to vector<8xf32>
    %27 = vector.shape_cast %26 : vector<8xf32> to vector<8x1xf32>
    %28 = tpu.reciprocal %27 {approx = true} : vector<8x1xf32> -> vector<8x1xf32>
    %29 = vector.broadcast %28 : vector<8x1xf32> to vector<8x8xf32>
    %30 = arith.mulf %25, %29 : vector<8x8xf32>
    %31 = arith.truncf %30 : vector<8x8xf32> to vector<8x8xbf16>
    %32 = vector.extract_strided_slice %15 {offsets = [0, 0], sizes = [8, 4], strides = [1, 1]} : vector<8x32xbf16> to vector<8x4xbf16>
    %cst_17 = arith.constant dense<0.000000e+00> : vector<8x4xf32>
    %33 = tpu.matmul %31, %32, %cst_17 {dimension_numbers = #tpu.dot_dimension_numbers<[1], [0], [0], [1], [0, 0, 1, 1], [], []>} : vector<8x8xbf16>, vector<8x4xbf16>, vector<8x4xf32> -> vector<8x4xf32>
    %34 = arith.truncf %33 : vector<8x4xf32> to vector<8x4xbf16>
    %c0_18 = arith.constant 0 : index
    %c0_19 = arith.constant 0 : index
    %c0_20 = arith.constant 0 : index
    %35 = vector.load %arg6[%c0_18, %c0_19, %c0_20] : memref<8x4x32xbf16, #tpu.memory_space<vmem>>, vector<1x4x32xbf16>
    %36 = vector.shape_cast %35 : vector<1x4x32xbf16> to vector<4x32xbf16>
    %cst_21 = arith.constant dense<0.000000e+00> : vector<8x32xf32>
    %37 = tpu.matmul %34, %36, %cst_21 {dimension_numbers = #tpu.dot_dimension_numbers<[1], [0], [0], [1], [0, 0, 1, 1], [], []>} : vector<8x4xbf16>, vector<4x32xbf16>, vector<8x32xf32> -> vector<8x32xf32>
    %38 = vector.extract_strided_slice %12 {offsets = [0, 4], sizes = [8, 4], strides = [1, 1]} : vector<8x32xf32> to vector<8x4xf32>
    %39 = arith.truncf %38 : vector<8x4xf32> to vector<8x4xbf16>
    %40 = vector.extract_strided_slice %13 {offsets = [0, 4], sizes = [8, 4], strides = [1, 1]} : vector<8x32xf32> to vector<8x4xf32>
    %41 = arith.truncf %40 : vector<8x4xf32> to vector<8x4xbf16>
    %cst_22 = arith.constant dense<0.000000e+00> : vector<8x8xf32>
    %42 = tpu.matmul %39, %41, %cst_22 {dimension_numbers = #tpu.dot_dimension_numbers<[1], [1], [0], [0], [0, 0, 1, 0], [], []>} : vector<8x4xbf16>, vector<8x4xbf16>, vector<8x8xf32> -> vector<8x8xf32>
    %cst_23 = arith.constant dense<0xFF800000> : vector<8xf32>
    %43 = vector.multi_reduction <maximumf>, %42, %cst_23 [1] : vector<8x8xf32> to vector<8xf32>
    %44 = vector.shape_cast %43 : vector<8xf32> to vector<8x1xf32>
    %45 = vector.broadcast %44 : vector<8x1xf32> to vector<8x8xf32>
    %46 = arith.subf %42, %45 : vector<8x8xf32>
    %47 = math.exp %46 : vector<8x8xf32>
    %cst_24 = arith.constant dense<0.000000e+00> : vector<8xf32>
    %48 = vector.multi_reduction <add>, %47, %cst_24 [1] : vector<8x8xf32> to vector<8xf32>
    %49 = vector.shape_cast %48 : vector<8xf32> to vector<8x1xf32>
    %50 = tpu.reciprocal %49 {approx = true} : vector<8x1xf32> -> vector<8x1xf32>
    %51 = vector.broadcast %50 : vector<8x1xf32> to vector<8x8xf32>
    %52 = arith.mulf %47, %51 : vector<8x8xf32>
    %53 = arith.truncf %52 : vector<8x8xf32> to vector<8x8xbf16>
    %54 = vector.extract_strided_slice %15 {offsets = [0, 4], sizes = [8, 4], strides = [1, 1]} : vector<8x32xbf16> to vector<8x4xbf16>
    %cst_25 = arith.constant dense<0.000000e+00> : vector<8x4xf32>
    %55 = tpu.matmul %53, %54, %cst_25 {dimension_numbers = #tpu.dot_dimension_numbers<[1], [0], [0], [1], [0, 0, 1, 1], [], []>} : vector<8x8xbf16>, vector<8x4xbf16>, vector<8x4xf32> -> vector<8x4xf32>
    %56 = arith.truncf %55 : vector<8x4xf32> to vector<8x4xbf16>
    %c1 = arith.constant 1 : index
    %c0_26 = arith.constant 0 : index
    %c0_27 = arith.constant 0 : index
    %57 = vector.load %arg6[%c1, %c0_26, %c0_27] : memref<8x4x32xbf16, #tpu.memory_space<vmem>>, vector<1x4x32xbf16>
    %58 = vector.shape_cast %57 : vector<1x4x32xbf16> to vector<4x32xbf16>
    %cst_28 = arith.constant dense<0.000000e+00> : vector<8x32xf32>
    %59 = tpu.matmul %56, %58, %cst_28 {dimension_numbers = #tpu.dot_dimension_numbers<[1], [0], [0], [1], [0, 0, 1, 1], [], []>} : vector<8x4xbf16>, vector<4x32xbf16>, vector<8x32xf32> -> vector<8x32xf32>
    %60 = arith.addf %37, %59 : vector<8x32xf32>
    %61 = vector.extract_strided_slice %12 {offsets = [0, 8], sizes = [8, 4], strides = [1, 1]} : vector<8x32xf32> to vector<8x4xf32>
    %62 = arith.truncf %61 : vector<8x4xf32> to vector<8x4xbf16>
    %63 = vector.extract_strided_slice %13 {offsets = [0, 8], sizes = [8, 4], strides = [1, 1]} : vector<8x32xf32> to vector<8x4xf32>
    %64 = arith.truncf %63 : vector<8x4xf32> to vector<8x4xbf16>
    %cst_29 = arith.constant dense<0.000000e+00> : vector<8x8xf32>
    %65 = tpu.matmul %62, %64, %cst_29 {dimension_numbers = #tpu.dot_dimension_numbers<[1], [1], [0], [0], [0, 0, 1, 0], [], []>} : vector<8x4xbf16>, vector<8x4xbf16>, vector<8x8xf32> -> vector<8x8xf32>
    %cst_30 = arith.constant dense<0xFF800000> : vector<8xf32>
    %66 = vector.multi_reduction <maximumf>, %65, %cst_30 [1] : vector<8x8xf32> to vector<8xf32>
    %67 = vector.shape_cast %66 : vector<8xf32> to vector<8x1xf32>
    %68 = vector.broadcast %67 : vector<8x1xf32> to vector<8x8xf32>
    %69 = arith.subf %65, %68 : vector<8x8xf32>
    %70 = math.exp %69 : vector<8x8xf32>
    %cst_31 = arith.constant dense<0.000000e+00> : vector<8xf32>
    %71 = vector.multi_reduction <add>, %70, %cst_31 [1] : vector<8x8xf32> to vector<8xf32>
    %72 = vector.shape_cast %71 : vector<8xf32> to vector<8x1xf32>
    %73 = tpu.reciprocal %72 {approx = true} : vector<8x1xf32> -> vector<8x1xf32>
    %74 = vector.broadcast %73 : vector<8x1xf32> to vector<8x8xf32>
    %75 = arith.mulf %70, %74 : vector<8x8xf32>
    %76 = arith.truncf %75 : vector<8x8xf32> to vector<8x8xbf16>
    %77 = vector.extract_strided_slice %15 {offsets = [0, 8], sizes = [8, 4], strides = [1, 1]} : vector<8x32xbf16> to vector<8x4xbf16>
    %cst_32 = arith.constant dense<0.000000e+00> : vector<8x4xf32>
    %78 = tpu.matmul %76, %77, %cst_32 {dimension_numbers = #tpu.dot_dimension_numbers<[1], [0], [0], [1], [0, 0, 1, 1], [], []>} : vector<8x8xbf16>, vector<8x4xbf16>, vector<8x4xf32> -> vector<8x4xf32>
    %79 = arith.truncf %78 : vector<8x4xf32> to vector<8x4xbf16>
    %c2 = arith.constant 2 : index
    %c0_33 = arith.constant 0 : index
    %c0_34 = arith.constant 0 : index
    %80 = vector.load %arg6[%c2, %c0_33, %c0_34] : memref<8x4x32xbf16, #tpu.memory_space<vmem>>, vector<1x4x32xbf16>
    %81 = vector.shape_cast %80 : vector<1x4x32xbf16> to vector<4x32xbf16>
    %cst_35 = arith.constant dense<0.000000e+00> : vector<8x32xf32>
    %82 = tpu.matmul %79, %81, %cst_35 {dimension_numbers = #tpu.dot_dimension_numbers<[1], [0], [0], [1], [0, 0, 1, 1], [], []>} : vector<8x4xbf16>, vector<4x32xbf16>, vector<8x32xf32> -> vector<8x32xf32>
    %83 = arith.addf %60, %82 : vector<8x32xf32>
    %84 = vector.extract_strided_slice %12 {offsets = [0, 12], sizes = [8, 4], strides = [1, 1]} : vector<8x32xf32> to vector<8x4xf32>
    %85 = arith.truncf %84 : vector<8x4xf32> to vector<8x4xbf16>
    %86 = vector.extract_strided_slice %13 {offsets = [0, 12], sizes = [8, 4], strides = [1, 1]} : vector<8x32xf32> to vector<8x4xf32>
    %87 = arith.truncf %86 : vector<8x4xf32> to vector<8x4xbf16>
    %cst_36 = arith.constant dense<0.000000e+00> : vector<8x8xf32>
    %88 = tpu.matmul %85, %87, %cst_36 {dimension_numbers = #tpu.dot_dimension_numbers<[1], [1], [0], [0], [0, 0, 1, 0], [], []>} : vector<8x4xbf16>, vector<8x4xbf16>, vector<8x8xf32> -> vector<8x8xf32>
    %cst_37 = arith.constant dense<0xFF800000> : vector<8xf32>
    %89 = vector.multi_reduction <maximumf>, %88, %cst_37 [1] : vector<8x8xf32> to vector<8xf32>
    %90 = vector.shape_cast %89 : vector<8xf32> to vector<8x1xf32>
    %91 = vector.broadcast %90 : vector<8x1xf32> to vector<8x8xf32>
    %92 = arith.subf %88, %91 : vector<8x8xf32>
    %93 = math.exp %92 : vector<8x8xf32>
    %cst_38 = arith.constant dense<0.000000e+00> : vector<8xf32>
    %94 = vector.multi_reduction <add>, %93, %cst_38 [1] : vector<8x8xf32> to vector<8xf32>
    %95 = vector.shape_cast %94 : vector<8xf32> to vector<8x1xf32>
    %96 = tpu.reciprocal %95 {approx = true} : vector<8x1xf32> -> vector<8x1xf32>
    %97 = vector.broadcast %96 : vector<8x1xf32> to vector<8x8xf32>
    %98 = arith.mulf %93, %97 : vector<8x8xf32>
    %99 = arith.truncf %98 : vector<8x8xf32> to vector<8x8xbf16>
    %100 = vector.extract_strided_slice %15 {offsets = [0, 12], sizes = [8, 4], strides = [1, 1]} : vector<8x32xbf16> to vector<8x4xbf16>
    %cst_39 = arith.constant dense<0.000000e+00> : vector<8x4xf32>
    %101 = tpu.matmul %99, %100, %cst_39 {dimension_numbers = #tpu.dot_dimension_numbers<[1], [0], [0], [1], [0, 0, 1, 1], [], []>} : vector<8x8xbf16>, vector<8x4xbf16>, vector<8x4xf32> -> vector<8x4xf32>
    %102 = arith.truncf %101 : vector<8x4xf32> to vector<8x4xbf16>
    %c3 = arith.constant 3 : index
    %c0_40 = arith.constant 0 : index
    %c0_41 = arith.constant 0 : index
    %103 = vector.load %arg6[%c3, %c0_40, %c0_41] : memref<8x4x32xbf16, #tpu.memory_space<vmem>>, vector<1x4x32xbf16>
    %104 = vector.shape_cast %103 : vector<1x4x32xbf16> to vector<4x32xbf16>
    %cst_42 = arith.constant dense<0.000000e+00> : vector<8x32xf32>
    %105 = tpu.matmul %102, %104, %cst_42 {dimension_numbers = #tpu.dot_dimension_numbers<[1], [0], [0], [1], [0, 0, 1, 1], [], []>} : vector<8x4xbf16>, vector<4x32xbf16>, vector<8x32xf32> -> vector<8x32xf32>
    %106 = arith.addf %83, %105 : vector<8x32xf32>
    %107 = vector.extract_strided_slice %12 {offsets = [0, 16], sizes = [8, 4], strides = [1, 1]} : vector<8x32xf32> to vector<8x4xf32>
    %108 = arith.truncf %107 : vector<8x4xf32> to vector<8x4xbf16>
    %109 = vector.extract_strided_slice %13 {offsets = [0, 16], sizes = [8, 4], strides = [1, 1]} : vector<8x32xf32> to vector<8x4xf32>
    %110 = arith.truncf %109 : vector<8x4xf32> to vector<8x4xbf16>
    %cst_43 = arith.constant dense<0.000000e+00> : vector<8x8xf32>
    %111 = tpu.matmul %108, %110, %cst_43 {dimension_numbers = #tpu.dot_dimension_numbers<[1], [1], [0], [0], [0, 0, 1, 0], [], []>} : vector<8x4xbf16>, vector<8x4xbf16>, vector<8x8xf32> -> vector<8x8xf32>
    %cst_44 = arith.constant dense<0xFF800000> : vector<8xf32>
    %112 = vector.multi_reduction <maximumf>, %111, %cst_44 [1] : vector<8x8xf32> to vector<8xf32>
    %113 = vector.shape_cast %112 : vector<8xf32> to vector<8x1xf32>
    %114 = vector.broadcast %113 : vector<8x1xf32> to vector<8x8xf32>
    %115 = arith.subf %111, %114 : vector<8x8xf32>
    %116 = math.exp %115 : vector<8x8xf32>
    %cst_45 = arith.constant dense<0.000000e+00> : vector<8xf32>
    %117 = vector.multi_reduction <add>, %116, %cst_45 [1] : vector<8x8xf32> to vector<8xf32>
    %118 = vector.shape_cast %117 : vector<8xf32> to vector<8x1xf32>
    %119 = tpu.reciprocal %118 {approx = true} : vector<8x1xf32> -> vector<8x1xf32>
    %120 = vector.broadcast %119 : vector<8x1xf32> to vector<8x8xf32>
    %121 = arith.mulf %116, %120 : vector<8x8xf32>
    %122 = arith.truncf %121 : vector<8x8xf32> to vector<8x8xbf16>
    %123 = vector.extract_strided_slice %15 {offsets = [0, 16], sizes = [8, 4], strides = [1, 1]} : vector<8x32xbf16> to vector<8x4xbf16>
    %cst_46 = arith.constant dense<0.000000e+00> : vector<8x4xf32>
    %124 = tpu.matmul %122, %123, %cst_46 {dimension_numbers = #tpu.dot_dimension_numbers<[1], [0], [0], [1], [0, 0, 1, 1], [], []>} : vector<8x8xbf16>, vector<8x4xbf16>, vector<8x4xf32> -> vector<8x4xf32>
    %125 = arith.truncf %124 : vector<8x4xf32> to vector<8x4xbf16>
    %c4 = arith.constant 4 : index
    %c0_47 = arith.constant 0 : index
    %c0_48 = arith.constant 0 : index
    %126 = vector.load %arg6[%c4, %c0_47, %c0_48] : memref<8x4x32xbf16, #tpu.memory_space<vmem>>, vector<1x4x32xbf16>
    %127 = vector.shape_cast %126 : vector<1x4x32xbf16> to vector<4x32xbf16>
    %cst_49 = arith.constant dense<0.000000e+00> : vector<8x32xf32>
    %128 = tpu.matmul %125, %127, %cst_49 {dimension_numbers = #tpu.dot_dimension_numbers<[1], [0], [0], [1], [0, 0, 1, 1], [], []>} : vector<8x4xbf16>, vector<4x32xbf16>, vector<8x32xf32> -> vector<8x32xf32>
    %129 = arith.addf %106, %128 : vector<8x32xf32>
    %130 = vector.extract_strided_slice %12 {offsets = [0, 20], sizes = [8, 4], strides = [1, 1]} : vector<8x32xf32> to vector<8x4xf32>
    %131 = arith.truncf %130 : vector<8x4xf32> to vector<8x4xbf16>
    %132 = vector.extract_strided_slice %13 {offsets = [0, 20], sizes = [8, 4], strides = [1, 1]} : vector<8x32xf32> to vector<8x4xf32>
    %133 = arith.truncf %132 : vector<8x4xf32> to vector<8x4xbf16>
    %cst_50 = arith.constant dense<0.000000e+00> : vector<8x8xf32>
    %134 = tpu.matmul %131, %133, %cst_50 {dimension_numbers = #tpu.dot_dimension_numbers<[1], [1], [0], [0], [0, 0, 1, 0], [], []>} : vector<8x4xbf16>, vector<8x4xbf16>, vector<8x8xf32> -> vector<8x8xf32>
    %cst_51 = arith.constant dense<0xFF800000> : vector<8xf32>
    %135 = vector.multi_reduction <maximumf>, %134, %cst_51 [1] : vector<8x8xf32> to vector<8xf32>
    %136 = vector.shape_cast %135 : vector<8xf32> to vector<8x1xf32>
    %137 = vector.broadcast %136 : vector<8x1xf32> to vector<8x8xf32>
    %138 = arith.subf %134, %137 : vector<8x8xf32>
    %139 = math.exp %138 : vector<8x8xf32>
    %cst_52 = arith.constant dense<0.000000e+00> : vector<8xf32>
    %140 = vector.multi_reduction <add>, %139, %cst_52 [1] : vector<8x8xf32> to vector<8xf32>
    %141 = vector.shape_cast %140 : vector<8xf32> to vector<8x1xf32>
    %142 = tpu.reciprocal %141 {approx = true} : vector<8x1xf32> -> vector<8x1xf32>
    %143 = vector.broadcast %142 : vector<8x1xf32> to vector<8x8xf32>
    %144 = arith.mulf %139, %143 : vector<8x8xf32>
    %145 = arith.truncf %144 : vector<8x8xf32> to vector<8x8xbf16>
    %146 = vector.extract_strided_slice %15 {offsets = [0, 20], sizes = [8, 4], strides = [1, 1]} : vector<8x32xbf16> to vector<8x4xbf16>
    %cst_53 = arith.constant dense<0.000000e+00> : vector<8x4xf32>
    %147 = tpu.matmul %145, %146, %cst_53 {dimension_numbers = #tpu.dot_dimension_numbers<[1], [0], [0], [1], [0, 0, 1, 1], [], []>} : vector<8x8xbf16>, vector<8x4xbf16>, vector<8x4xf32> -> vector<8x4xf32>
    %148 = arith.truncf %147 : vector<8x4xf32> to vector<8x4xbf16>
    %c5 = arith.constant 5 : index
    %c0_54 = arith.constant 0 : index
    %c0_55 = arith.constant 0 : index
    %149 = vector.load %arg6[%c5, %c0_54, %c0_55] : memref<8x4x32xbf16, #tpu.memory_space<vmem>>, vector<1x4x32xbf16>
    %150 = vector.shape_cast %149 : vector<1x4x32xbf16> to vector<4x32xbf16>
    %cst_56 = arith.constant dense<0.000000e+00> : vector<8x32xf32>
    %151 = tpu.matmul %148, %150, %cst_56 {dimension_numbers = #tpu.dot_dimension_numbers<[1], [0], [0], [1], [0, 0, 1, 1], [], []>} : vector<8x4xbf16>, vector<4x32xbf16>, vector<8x32xf32> -> vector<8x32xf32>
    %152 = arith.addf %129, %151 : vector<8x32xf32>
    %153 = vector.extract_strided_slice %12 {offsets = [0, 24], sizes = [8, 4], strides = [1, 1]} : vector<8x32xf32> to vector<8x4xf32>
    %154 = arith.truncf %153 : vector<8x4xf32> to vector<8x4xbf16>
    %155 = vector.extract_strided_slice %13 {offsets = [0, 24], sizes = [8, 4], strides = [1, 1]} : vector<8x32xf32> to vector<8x4xf32>
    %156 = arith.truncf %155 : vector<8x4xf32> to vector<8x4xbf16>
    %cst_57 = arith.constant dense<0.000000e+00> : vector<8x8xf32>
    %157 = tpu.matmul %154, %156, %cst_57 {dimension_numbers = #tpu.dot_dimension_numbers<[1], [1], [0], [0], [0, 0, 1, 0], [], []>} : vector<8x4xbf16>, vector<8x4xbf16>, vector<8x8xf32> -> vector<8x8xf32>
    %cst_58 = arith.constant dense<0xFF800000> : vector<8xf32>
    %158 = vector.multi_reduction <maximumf>, %157, %cst_58 [1] : vector<8x8xf32> to vector<8xf32>
    %159 = vector.shape_cast %158 : vector<8xf32> to vector<8x1xf32>
    %160 = vector.broadcast %159 : vector<8x1xf32> to vector<8x8xf32>
    %161 = arith.subf %157, %160 : vector<8x8xf32>
    %162 = math.exp %161 : vector<8x8xf32>
    %cst_59 = arith.constant dense<0.000000e+00> : vector<8xf32>
    %163 = vector.multi_reduction <add>, %162, %cst_59 [1] : vector<8x8xf32> to vector<8xf32>
    %164 = vector.shape_cast %163 : vector<8xf32> to vector<8x1xf32>
    %165 = tpu.reciprocal %164 {approx = true} : vector<8x1xf32> -> vector<8x1xf32>
    %166 = vector.broadcast %165 : vector<8x1xf32> to vector<8x8xf32>
    %167 = arith.mulf %162, %166 : vector<8x8xf32>
    %168 = arith.truncf %167 : vector<8x8xf32> to vector<8x8xbf16>
    %169 = vector.extract_strided_slice %15 {offsets = [0, 24], sizes = [8, 4], strides = [1, 1]} : vector<8x32xbf16> to vector<8x4xbf16>
    %cst_60 = arith.constant dense<0.000000e+00> : vector<8x4xf32>
    %170 = tpu.matmul %168, %169, %cst_60 {dimension_numbers = #tpu.dot_dimension_numbers<[1], [0], [0], [1], [0, 0, 1, 1], [], []>} : vector<8x8xbf16>, vector<8x4xbf16>, vector<8x4xf32> -> vector<8x4xf32>
    %171 = arith.truncf %170 : vector<8x4xf32> to vector<8x4xbf16>
    %c6 = arith.constant 6 : index
    %c0_61 = arith.constant 0 : index
    %c0_62 = arith.constant 0 : index
    %172 = vector.load %arg6[%c6, %c0_61, %c0_62] : memref<8x4x32xbf16, #tpu.memory_space<vmem>>, vector<1x4x32xbf16>
    %173 = vector.shape_cast %172 : vector<1x4x32xbf16> to vector<4x32xbf16>
    %cst_63 = arith.constant dense<0.000000e+00> : vector<8x32xf32>
    %174 = tpu.matmul %171, %173, %cst_63 {dimension_numbers = #tpu.dot_dimension_numbers<[1], [0], [0], [1], [0, 0, 1, 1], [], []>} : vector<8x4xbf16>, vector<4x32xbf16>, vector<8x32xf32> -> vector<8x32xf32>
    %175 = arith.addf %152, %174 : vector<8x32xf32>
    %176 = vector.extract_strided_slice %12 {offsets = [0, 28], sizes = [8, 4], strides = [1, 1]} : vector<8x32xf32> to vector<8x4xf32>
    %177 = arith.truncf %176 : vector<8x4xf32> to vector<8x4xbf16>
    %178 = vector.extract_strided_slice %13 {offsets = [0, 28], sizes = [8, 4], strides = [1, 1]} : vector<8x32xf32> to vector<8x4xf32>
    %179 = arith.truncf %178 : vector<8x4xf32> to vector<8x4xbf16>
    %cst_64 = arith.constant dense<0.000000e+00> : vector<8x8xf32>
    %180 = tpu.matmul %177, %179, %cst_64 {dimension_numbers = #tpu.dot_dimension_numbers<[1], [1], [0], [0], [0, 0, 1, 0], [], []>} : vector<8x4xbf16>, vector<8x4xbf16>, vector<8x8xf32> -> vector<8x8xf32>
    %cst_65 = arith.constant dense<0xFF800000> : vector<8xf32>
    %181 = vector.multi_reduction <maximumf>, %180, %cst_65 [1] : vector<8x8xf32> to vector<8xf32>
    %182 = vector.shape_cast %181 : vector<8xf32> to vector<8x1xf32>
    %183 = vector.broadcast %182 : vector<8x1xf32> to vector<8x8xf32>
    %184 = arith.subf %180, %183 : vector<8x8xf32>
    %185 = math.exp %184 : vector<8x8xf32>
    %cst_66 = arith.constant dense<0.000000e+00> : vector<8xf32>
    %186 = vector.multi_reduction <add>, %185, %cst_66 [1] : vector<8x8xf32> to vector<8xf32>
    %187 = vector.shape_cast %186 : vector<8xf32> to vector<8x1xf32>
    %188 = tpu.reciprocal %187 {approx = true} : vector<8x1xf32> -> vector<8x1xf32>
    %189 = vector.broadcast %188 : vector<8x1xf32> to vector<8x8xf32>
    %190 = arith.mulf %185, %189 : vector<8x8xf32>
    %191 = arith.truncf %190 : vector<8x8xf32> to vector<8x8xbf16>
    %192 = vector.extract_strided_slice %15 {offsets = [0, 28], sizes = [8, 4], strides = [1, 1]} : vector<8x32xbf16> to vector<8x4xbf16>
    %cst_67 = arith.constant dense<0.000000e+00> : vector<8x4xf32>
    %193 = tpu.matmul %191, %192, %cst_67 {dimension_numbers = #tpu.dot_dimension_numbers<[1], [0], [0], [1], [0, 0, 1, 1], [], []>} : vector<8x8xbf16>, vector<8x4xbf16>, vector<8x4xf32> -> vector<8x4xf32>
    %194 = arith.truncf %193 : vector<8x4xf32> to vector<8x4xbf16>
    %c7 = arith.constant 7 : index
    %c0_68 = arith.constant 0 : index
    %c0_69 = arith.constant 0 : index
    %195 = vector.load %arg6[%c7, %c0_68, %c0_69] : memref<8x4x32xbf16, #tpu.memory_space<vmem>>, vector<1x4x32xbf16>
    %196 = vector.shape_cast %195 : vector<1x4x32xbf16> to vector<4x32xbf16>
    %cst_70 = arith.constant dense<0.000000e+00> : vector<8x32xf32>
    %197 = tpu.matmul %194, %196, %cst_70 {dimension_numbers = #tpu.dot_dimension_numbers<[1], [0], [0], [1], [0, 0, 1, 1], [], []>} : vector<8x4xbf16>, vector<4x32xbf16>, vector<8x32xf32> -> vector<8x32xf32>
    %198 = arith.addf %175, %197 : vector<8x32xf32>
    %c0_71 = arith.constant 0 : index
    %c0_72 = arith.constant 0 : index
    %c0_73 = arith.constant 0 : index
    %199 = vector.load %arg8[%c0_71, %c0_72, %c0_73] : memref<1x8x32xf32, #tpu.memory_space<vmem>>, vector<1x8x32xf32>
    %200 = vector.shape_cast %199 : vector<1x8x32xf32> to vector<8x32xf32>
    %201 = arith.addf %200, %198 : vector<8x32xf32>
    %c0_74 = arith.constant 0 : index
    %c0_75 = arith.constant 0 : index
    %c0_76 = arith.constant 0 : index
    %202 = vector.load %arg8[%c0_74, %c0_75, %c0_76] : memref<1x8x32xf32, #tpu.memory_space<vmem>>, vector<1x8x32xf32>
    %203 = vector.shape_cast %202 : vector<1x8x32xf32> to vector<8x32xf32>
    %204 = vector.shape_cast %201 : vector<8x32xf32> to vector<1x8x32xf32>
    tpu.vector_store %arg8[%c0_74, %c0_75, %c0_76], %204 {strides = array<i32>} : memref<1x8x32xf32, #tpu.memory_space<vmem>>, vector<1x8x32xf32>,
    return
  }
  func.func @transform_0(%arg0: i32, %arg1: i32) -> (i32, i32, i32) {
    %c0_i32 = arith.constant 0 : i32
    %c0_i32_0 = arith.constant 0 : i32
    %c0_i32_1 = arith.constant 0 : i32
    return %arg0, %c0_i32, %c0_i32_0 : i32, i32, i32
  }
  func.func @transform_1(%arg0: i32, %arg1: i32) -> (i32, i32, i32) {
    %c0_i32 = arith.constant 0 : i32
    %c0_i32_0 = arith.constant 0 : i32
    %c0_i32_1 = arith.constant 0 : i32
    return %arg1, %c0_i32, %c0_i32_0 : i32, i32, i32
  }
  func.func @transform_2(%arg0: i32, %arg1: i32) -> (i32, i32, i32) {
    %c0_i32 = arith.constant 0 : i32
    %c0_i32_0 = arith.constant 0 : i32
    %c0_i32_1 = arith.constant 0 : i32
    return %arg1, %c0_i32, %c0_i32_0 : i32, i32, i32
  }
  func.func @transform_3(%arg0: i32, %arg1: i32) -> (i32, i32, i32) {
    %c0_i32 = arith.constant 0 : i32
    %c0_i32_0 = arith.constant 0 : i32
    %c0_i32_1 = arith.constant 0 : i32
    return %arg1, %c0_i32, %c0_i32_0 : i32, i32, i32
  }
  func.func @transform_4(%arg0: i32, %arg1: i32) -> (i32, i32, i32) {
    %c0_i32 = arith.constant 0 : i32
    %c0_i32_0 = arith.constant 0 : i32
    %c0_i32_1 = arith.constant 0 : i32
    return %arg1, %c0_i32, %c0_i32_0 : i32, i32, i32
  }
  func.func @transform_5(%arg0: i32, %arg1: i32) -> (i32, i32) {
    %c0_i32 = arith.constant 0 : i32
    %c0_i32_0 = arith.constant 0 : i32
    %c0_i32_1 = arith.constant 0 : i32
    return %c0_i32, %c0_i32_0 : i32, i32
  }
  func.func @transform_6(%arg0: i32, %arg1: i32) -> (i32, i32, i32) {
    %c0_i32 = arith.constant 0 : i32
    %c0_i32_0 = arith.constant 0 : i32
    %c0_i32_1 = arith.constant 0 : i32
    return %arg0, %c0_i32, %c0_i32_0 : i32, i32, i32
  }
}

</mosaic_0001>

<bundles_post_ra>
// kernel: tpu_custom_call.1
= control target key start
LH: loop header
LB: loop body
LE: loop exit
PB: predicated region body
PF: predicated region fallthrough
CT: control target
= control target key end

     0   :  { %11 = vsyncpa [#allocation3], 0  ;;  %s2075_s0 = inlined_call_operand.hbm [shape: f32[2,8,32], index: 0, kind: input, shape index: {}]   ;;  %s2076_s1 = inlined_call_operand.hbm [shape: bf16[1,32,32], index: 1, kind: input, shape index: {}]   ;;  %s2077_s2 = inlined_call_operand.hbm [shape: bf16[1,32,32], index: 2, kind: input, shape index: {}]   ;;  %s2078_s3 = inlined_call_operand.hbm [shape: bf16[1,32,32], index: 3, kind: input, shape index: {}]   ;;  %s2079_s4 = inlined_call_operand.hbm [shape: bf16[8,4,32], index: 4, kind: input, shape index: {}]   ;;  %s2080_s5 = inlined_call_operand.vmem [shape: f32[1,32], index: 5, kind: input, shape index: {}]   ;;  %s2081_s6 = inlined_call_operand.hbm [shape: f32[2,8,32], index: 6, kind: output, shape index: {}]  }
   0x1   :  { %13 = vsyncpa [#allocation3 + $0x1], 0 }
   0x2   :  { %14 = vsyncpa [#allocation6], 0 }
   0x3   :  { %15 = vsyncpa [#allocation9], 0 }
   0x4   :  { %16 = vsyncpa [#allocation4], 0 }
   0x5   :  { %18 = vsyncpa [#allocation4 + $0x1], 0  ;;  %s1780_s21 = smov 0   ;;  %s1782_s22 = smov 0  }
   0x6   :  { %s1784_s23 = smov 0   ;;  %s1786_s24 = smov 0  }
   0x7   :  { %s1788_s25 = smov 0   ;;  %s1790_s26 = smov 0  }
   0x8 LB: > { %s1263_s27 = sadd.s32 4294967295, %s1728_s26   ;;  %p1265_p0 = scmp.ge.s32.totalorder %s1728_s26, 1  ;;  %s1728_s26 = sphi %s1790_s26, %s24_s26   ;;  %s1724_s25 = sphi %s1788_s25, %s2092_s25   ;;  %s1720_s24 = sphi %s1786_s24, %s2091_s24   ;;  %s1716_s23 = sphi %s1784_s23, %s2090_s23   ;;  %s1712_s22 = sphi %s1782_s22, %s2089_s22   ;;  %s1708_s21 = sphi %s1780_s21, %s2088_s21  }
   0x9   : > { %p1814_p1 = scmp.eq.s32.totalorder %s1263_s27, 0  ;;  %p218_p2 = scmp.lt.s32.totalorder %s1728_s26, 3 }
   0xa   : > { %s232_s7 = sshll.u32 %s2076_s1, 4  ;;  %s1730_s9 = smov [#allocation5]   ;;  %s233_s7 = int_to_ptr.hbm [resolvable:$true] %s232_s7 }
   0xb   : > { %p1822_p3 = pnand %p1265_p0, %p218_p2  ;;  %s234_s10 = sshll.u32 %s1730_s9, 4  ;;  %s235_s10 = int_to_ptr.vmem [resolvable:$true] %s234_s10 }
   0xc   : > { %p1270_p6 = scmp.ge.s32.totalorder %s1728_s26, 2  ;;  %s266_s14 = sshll.u32 %s2078_s3, 4  ;;  %s267_s14 = int_to_ptr.hbm [resolvable:$true] %s266_s14 }
   0xd   : > { %p1361_p4 = pneg %p1822_p3  ;;  %s1731_s15 = smov 64  }
   0xe   : > { %s1732_s16 = smov 4   ;;  %s1733_s17 = smov [#allocation8]  }
   0xf   : > { %p1830_p5 = pnand %p1361_p4, %p1814_p1  ;;  %s268_s18 = sshll.u32 %s1733_s17, 4  ;;  %s269_s18 = int_to_ptr.vmem [resolvable:$true] %s268_s18 }
  0x10   : > { %s249_s29 = sshll.u32 %s2077_s2, 4  ;;  %s283_s12 = sshll.u32 %s2079_s4, 4  ;;  %s250_s29 = int_to_ptr.hbm [resolvable:$true] %s249_s29  ;;  %s284_s12 = int_to_ptr.hbm [resolvable:$true] %s283_s12 }
  0x11   : > { %1364 = dma.hbm_to_vmem [thread:$0]  (!%p1830_p5), %s233_s7, 256, %s235_s10, [#allocation6], %s1731_s15, %s1731_s15, %s1732_s16  }
  0x12   : > { %1370 = dma.hbm_to_vmem [thread:$0]  (!%p1830_p5), %s267_s14, 256, %s269_s18, [#allocation9], %s1731_s15, %s1731_s15, %s1732_s16  }
  0x13   : > { %s1734_s7 = smov [#allocation7]   ;;  %s1735_s13 = smov [#allocation10]  }
  0x14   : > { %s251_s10 = sshll.u32 %s1734_s7, 4  ;;  %s285_s14 = sshll.u32 %s1735_s13, 4  ;;  %s252_s10 = int_to_ptr.vmem [resolvable:$true] %s251_s10  ;;  %s286_s14 = int_to_ptr.vmem [resolvable:$true] %s285_s14 }
  0x15   : > { %1367 = dma.hbm_to_vmem [thread:$0]  (!%p1830_p5), %s250_s29, 256, %s252_s10, [#allocation6], %s1731_s15, %s1731_s15, %s1732_s16  }
  0x16   : > { %s1736_s17 = smov 32   ;;  %s1737_s18 = smov 2  }
  0x17   : > { %1373 = dma.hbm_to_vmem [thread:$0]  (!%p1830_p5), %s284_s12, 256, %s286_s14, [#allocation9], %s1736_s17, %s1736_s17, %s1737_s18  }
  0x18   : > { %s36_s19 = sadd.s32 1, %s1724_s25  ;;  %s1264_s20 = sadd.s32 4294967294, %s1728_s26  }
  0x19   : > { %p38_p7 = scmp.ge.s32.totalorder %s36_s19, 2  ;;  %s43_s30 = sadd.s32 1, %s1716_s23 }
  0x1a   : > { %p50_p8 = scmp.ne.s32.totalorder %s1716_s23, %s1712_s22  ;;  %p51_p9 = scmp.eq.s32.totalorder %s1728_s26, 0 }
  0x1b   : > { %s2094_s19 = smov (%p38_p7, %s36_s19), 0  ;;  %p56_p10 = scmp.ne.s32.totalorder %s1712_s22, %s1708_s21 }
  0x1c   : > { %s40_s15 = ssub.s32 %s1724_s25, %s2094_s19  ;;  %p205_p11 = scmp.eq.s32.totalorder %s1263_s27, 1 }
  0x1d   : > { %p41_p12 = scmp.eq.s32.totalorder %s40_s15, 0  ;;  %p1868_p13 = por %p1814_p1, %p56_p10 }
  0x1e   : > { %p1872_p0 = por %p205_p11, %p50_p8  ;;  %p211_p2 = scmp.eq.s32.totalorder %s1264_s20, 1 }
  0x1f   : > { %s1877_s29 = scalar_select %p41_p12, %s1716_s23, %s43_s30  }
  0x20   : > { %p52_p4 = por %p51_p9, %p50_p8  ;;  %p1879_p5 = por %p211_p2, %p56_p10 }
  0x21   : > { %s302_s12 = sand.u32 1, %s1716_s23   ;;  %s1272_s27 = sshll.u32 %s1724_s25, 3 }
  0x22   : > { %p1386_p7 = scmp.lt.s32.totalorder %s1728_s26, 2  ;;  %s1271_s7 = sshll.u32 %s302_s12, 3 }
  0x23   : > { %s310_s14 = scalar_lea.hbm %s2075_s0, %s1272_s27  ;;  %s306_s18 = scalar_lea.vmem [#allocation2], %s1271_s7 }
  0x24   : > { %s312_s17 = sshll.u32 %s310_s14, 4  ;;  %s314_s15 = sshll.u32 %s306_s18, 4  ;;  %s313_s17 = int_to_ptr.hbm [resolvable:$true] %s312_s17  ;;  %s315_s15 = int_to_ptr.vmem [resolvable:$true] %s314_s15 }
  0x25   : > { %p1375_p11 = pnand %p1386_p7, %p52_p4  ;;  %s303_s20 = scalar_lea.sflag [#allocation3], %s302_s12 }
  0x26   : > { %323 = sbr.rel (%p1822_p3) target bundleno = 2456 (0x998), region = 44  ;;  %s1892_s30 = sand.u32 (!%p1822_p3), 1, %s1712_s22  }
  0x27   : > { %1377 = dma.hbm_to_vmem [thread:$0]  (!%p1375_p11), %s313_s17, 128, %s315_s15, %s303_s20  }
  0x28   : > { %s1274_s10 = sshll.u32 (!%p1822_p3), %s1892_s30, 3  ;;  %s326_s27 = scalar_lea.sflag (!%p1822_p3), [#allocation3], %s1892_s30 }
  0x29   : > { %s329_s7 = scalar_lea.vmem (!%p1822_p3), [#allocation2], %s1274_s10 }
  0x2b   : > { %1691 = dma.done.wait (%p1868_p13), %s326_s27, 128  }
  0x2c   : > { %1693 = vsyncadd (%p1868_p13), %s326_s27, 4294967168 }
  0x2d   : > { %1695 = dma.done.wait (%p1814_p1), [#allocation6], 512  }
  0x2e   : > { %1697 = vsyncadd (%p1814_p1), [#allocation6], 4294966784 }
  0x2f   : > { %1699 = dma.done.wait (%p1814_p1), [#allocation9], 512  }
  0x30   : > { %1701 = vsyncadd (%p1814_p1), [#allocation9], 4294966784  ;;  %v1336_v0 = vld [vmem:[#allocation5 + $0x8] sm:$0xff]  ;;  %v1338_v1 = vld [vmem:[#allocation7 + $0x8] sm:$0xff]  ;;  %vm390_vm0 = vcmask 261120   ;;  %vm488_vm1 = vcmask 31744  }
  0x31   : > { %428 = vmatpush.bf16.msra.mxu0 %v1336_v0  ;;  %453 = vmatpush.bf16.msra.mxu1 %v1338_v1  ;;  %v1335_v2 = vld [vmem:[#allocation5] sm:$0xff]  ;;  %v1337_v3 = vld [vmem:[#allocation7] sm:$0xff]  ;;  %s1738_s28 = smov 120   ;;  %s1739_s8 = smov 124   ;;  %v1340_v17 = vld [vmem:[#allocation8 + $0x8] sm:$0xff]  ;;  %vm508_vm2 = vcmask 64512  }
  0x32   : > { %v404_v4 = vld [vmem:[%s329_s7] sm:$0xff]  ;;  %s1740_s11 = smov 116   ;;  %478 = vmatpush.bf16.msra.mxu2 %v1340_v17  ;;  %v1339_v18 = vld [vmem:[#allocation8] sm:$0xff]  ;;  %vm524_vm3 = vcmask 1043456   ;;  %vm610_vm4 = vcmask 1041408   ;;  %s1741_s12 = smov 112  }
  0x33   : > { %v405_v5 = vpack.c.bf16 %v404_v4, %v404_v4  ;;  %v542_v36 = vld [vmem:[#allocation10] sm:$0x3]  ;;  %s1742_s13 = smov 108   ;;  %v606_v57 = vld [vmem:[#allocation10 + $0x2] sm:$0x3]  ;;  %s1743_s14 = smov 100  }
  0x34   : > { %v631_v37 = vsel %vm610_vm4, %v542_v36, 0  ;;  %v612_v58 = vsel %vm610_vm4, %v606_v57, 0  ;;  %s1744_s17 = smov 104   ;;  %s378_s20 = scalar_lea.vmem [#allocation11], %s1274_s10 }
  0x35   : > { %429 = vmatpush.bf16.msra.mxu0 %v1335_v2  ;;  %454 = vmatpush.bf16.msra.mxu1 %v1337_v3  ;;  %v704_v2 = vld [vmem:[#allocation10 + $0x4] sm:$0x3]  ;;  %s1332_s27 = sshll.u32 %s1720_s24, 3  ;;  %s1124_s10 = scalar_lea.sflag [#allocation4], %s1892_s30 }
  0x36   : > { %479 = vmatpush.bf16.msra.mxu2 %v1339_v18  ;;  %v709_v3 = vsel %vm610_vm4, %v704_v2, 0  ;;  %s1658_s18 = scalar_lea.hbm %s2081_s6, 16 }
  0x38   : > { %1288 = vmatmul.msk.bf16.vlgmr.msra.gmra.mxu0 %vm390_vm0, %v405_v5  ;;  %1297 = vmatmul.msk.bf16.vlgmr.msra.gmra.mxu1 %vm390_vm0, %v405_v5 }
  0x39   : > { %1306 = vmatmul.msk.bf16.vlgmr.msra.gmra.mxu2 %vm390_vm0, %v405_v5 }
  0xb5   : > { %v431_v6 = vpop.f32.mrf.mxu0  ;;  %v456_v7 = vpop.f32.mrf.mxu1 }
  0xb6   : > { %v1912_v8 = vpack.c.bf16 %v456_v7, %v456_v7  ;;  %v1920_v10 = vpack.c.bf16 %v431_v6, %v431_v6 }
  0xb8   : > { %648 = vrot.lane.b32.xlu2 %v1912_v8, %s1738_s28  ;;  %547 = vrot.lane.b32.xlu1 %v1912_v8, %s1739_s8  ;;  %v493_v9 = vsel %vm488_vm1, %v1912_v8, 0 }
  0xb9   : > { %502 = vmatpush.bf16.xpose.msra.mxu3 %v493_v9 }
  0xbc   : > { %v481_v31 = vpop.f32.mrf.mxu2 }
  0xbd   : > { %v433_v11 = vpop.f32.mrf.mxu0  ;;  %v458_v12 = vpop.f32.mrf.mxu1  ;;  %v485_v33 = vpack.c.bf16 %v481_v31, %v481_v31 }
  0xbf   : > { %v526_v35 = vsel %vm524_vm3, %v485_v33, 0  ;;  %v581_v47 = vunpack.c.l.b16 %v485_v33 }
  0xc0   : > { %727 = vrot.lane.b32.xlu2 %v1912_v8, %s1740_s11  ;;  %544 = vrot.lane.b32.xlu1 %v1920_v10, %s1739_s8 }
  0xc1   : > { %1307 = vmatmul.msk.bf16.vlgmr.msra.gmra.mxu3 %vm488_vm1, %v1920_v10  ;;  %535 = vmatpush.bf16.msrb.mxu0 %v526_v35  ;;  %v1944_v49 = vpack.c.b16 %v581_v47, %v581_v47 }
  0xc2   : > { %621 = vmatpush.bf16.msrb.mxu3 %v612_v58 }
  0xc4   : > { %v483_v32 = vpop.f32.mrf.mxu2 }
  0xc5   : > { %640 = vmatpush.bf16.msra.mxu0 %v631_v37 }
  0xc6   : > { %718 = vmatpush.bf16.msra.mxu3 %v709_v3 }
  0xc8   : > { %725 = vrot.lane.b32.xlu1 %v1920_v10, %s1740_s11 }
 0x112   : > { %v649_v13 = vpop.permute.xlu2 %648 }
 0x113   : > { %v654_v16 = vsel %vm488_vm1, %v649_v13, 0 }
 0x11a   : > { %v728_v34 = vpop.permute.xlu2 %727 }
 0x11b   : > { %v733_v48 = vsel %vm488_vm1, %v728_v34, 0 }
 0x12a   : > { %v548_v14 = vpop.permute.xlu1 %547 }
 0x12b   : > { %v553_v15 = vsel %vm488_vm1, %v548_v14, 0 }
 0x12c   : > { %562 = vmatpush.bf16.xpose.msrb.mxu1 %v553_v15 }
 0x132   : > { %v545_v19 = vpop.permute.xlu1 %544 }
 0x133   : > { %1309 = vmatmul.msk.bf16.vlgmr.msrb.gmra.mxu1 %vm488_vm1, %v545_v19 }
 0x134   : > { %663 = vmatpush.bf16.xpose.msra.mxu1 %v654_v16 }
 0x13a   : > { %v726_v1 = vpop.permute.xlu1 %725 }
 0x144   : > { %v504_v20 = vpop.f32.mrf.mxu3 }
 0x145   : > { %v509_v21 = vsel %vm508_vm2, %v504_v20, -inf }
 0x146   : > { %510 = vmax.xlane.f32.xlu0 %v509_v21 }
 0x14c   : > { %v506_v22 = vpop.f32.mrf.mxu3 }
 0x1b0   : > { %v564_v23 = vpop.f32.mrf.mxu1 }
 0x1b1   : > { %v568_v24 = vsel %vm508_vm2, %v564_v23, -inf }
 0x1b2   : > { %569 = vmax.xlane.f32.xlu2 %v568_v24 }
 0x1b8   : > { %v566_v25 = vpop.f32.mrf.mxu1 }
 0x1b9   : > { %v511_v26 = vpop.xlane.xlu0 %510 }
 0x1ba   : > { %v512_v27 = vsub.f32 %v504_v20, %v511_v26 }
 0x1bc   : > { %v513_v28 = vmul.f32 1.442695, %v512_v27 }
 0x1be   : > { %1456 = vpow2.f32 %v513_v28 }
 0x1c4   : > { %v1457_v29 = vpop.eup %1456 }
 0x1c5   : > { %v515_v30 = vsel %vm508_vm2, %v1457_v29, 0.0 }
 0x1c6   : > { %516 = vadd.xlane.f32.xlu0 %v515_v30  ;;  %v783_v30 = vld [vmem:[#allocation10 + $0x6] sm:$0x3] }
 0x1c7   : > { %v788_v33 = vsel %vm610_vm4, %v783_v30, 0 }
 0x1da   : > { %646 = vrot.lane.b32.xlu0 %v1920_v10, %s1738_s28 }
 0x225   : > { %v570_v38 = vpop.xlane.xlu2 %569 }
 0x226   : > { %v571_v39 = vsub.f32 %v564_v23, %v570_v38 }
 0x228   : > { %v572_v40 = vmul.f32 1.442695, %v571_v39 }
 0x22a   : > { %1458 = vpow2.f32 %v572_v40 }
 0x230   : > { %v1459_v41 = vpop.eup %1458 }
 0x231   : > { %v574_v42 = vsel %vm508_vm2, %v1459_v41, 0.0 }
 0x232   : > { %575 = vadd.xlane.f32.xlu2 %v574_v42 }
 0x239   : > { %v517_v43 = vpop.xlane.xlu0 %516 }
 0x23a   : > { %1460 = vrcp.f32 %v517_v43 }
 0x240   : > { %v1461_v44 = vpop.eup %1460 }
 0x241   : > { %v519_v45 = vmul.f32 %v1461_v44, %v1457_v29 }
 0x243   : > { %v520_v46 = vpack.c.bf16 %v519_v45, %v519_v45 }
 0x245   : > { %1308 = vmatmul.msk.bf16.vlgmr.msrb.gmra.mxu0 %vm508_vm2, %v520_v46 }
 0x246   : > { %742 = vmatpush.bf16.xpose.msrb.mxu0 %v733_v48 }
 0x24a   : > { %583 = vrot.lane.b32.xlu2 %v1944_v49, %s1739_s8  ;;  %s1134_s8 = scalar_lea.hbm %s2081_s6, %s1332_s27 }
 0x24c   : > { %v647_v50 = vpop.permute.xlu0 %646 }
 0x24d   : > { %1313 = vmatmul.msk.bf16.vlgmr.msra.gmra.mxu1 %vm488_vm1, %v647_v50 }
 0x252   : > { %806 = vrot.lane.b32.xlu2 %v1912_v8, %s1741_s12 }
 0x25a   : > { %885 = vrot.lane.b32.xlu2 %v1912_v8, %s1742_s13 }
 0x262   : > { %883 = vrot.lane.b32.xlu2 %v1920_v10, %s1742_s13 }
 0x2a5   : > { %v576_v51 = vpop.xlane.xlu2 %575 }
 0x2a6   : > { %1462 = vrcp.f32 %v576_v51 }
 0x2ac   : > { %v1463_v52 = vpop.eup %1462 }
 0x2ad   : > { %v578_v53 = vmul.f32 %v1463_v52, %v1459_v41  ;;  %v584_v54 = vpop.permute.xlu2 %583 }
 0x2ae   : > { %v589_v55 = vsel %vm524_vm3, %v584_v54, 0 }
 0x2af   : > { %598 = vmatpush.bf16.msrb.mxu2 %v589_v55  ;;  %v579_v56 = vpack.c.bf16 %v578_v53, %v578_v53 }
 0x2b2   : > { %1310 = vmatmul.msk.bf16.vlgmr.msrb.gmra.mxu2 %vm508_vm2, %v579_v56 }
 0x2b5   : > { %v807_v4 = vpop.permute.xlu2 %806 }
 0x2b6   : > { %v812_v7 = vsel %vm488_vm1, %v807_v4, 0 }
 0x2bd   : > { %v886_v35 = vpop.permute.xlu2 %885 }
 0x2be   : > { %v891_v37 = vsel %vm488_vm1, %v886_v35, 0 }
 0x2c2   : > { %v537_v59 = vpop.f32.mrf.mxu0 }
 0x2c3   : > { %v541_v60 = vpack.c.bf16 %v537_v59, %v537_v59 }
 0x2c5   : > { %1312 = vmatmul.msk.bf16.vlgmr.msra.gmra.mxu0 %vm488_vm1, %v541_v60  ;;  %v884_v56 = vpop.permute.xlu2 %883 }
 0x2ca   : > { %v539_v61 = vpop.f32.mrf.mxu0  ;;  %v665_v62 = vpop.f32.mrf.mxu1 }
 0x2cb   : > { %v669_v63 = vsel %vm508_vm2, %v665_v62, -inf }
 0x2cc   : > { %670 = vmax.xlane.f32.xlu1 %v669_v63 }
 0x2d2   : > { %v667_v0 = vpop.f32.mrf.mxu1 }
 0x2d5   : > { %1316 = vmatmul.msk.bf16.vlgmr.msrb.gmra.mxu0 %vm488_vm1, %v726_v1 }
 0x335   : > { %v600_v5 = vpop.f32.mrf.mxu2 }
 0x336   : > { %v604_v6 = vpack.c.bf16 %v600_v5, %v600_v5 }
 0x338   : > { %1311 = vmatmul.msk.bf16.vlgmr.msrb.gmra.mxu3 %vm488_vm1, %v604_v6 }
 0x339   : > { %821 = vmatpush.bf16.xpose.msrb.mxu3 %v812_v7 }
 0x33d   : > { %v602_v9 = vpop.f32.mrf.mxu2 }
 0x33f   : > { %v671_v11 = vpop.xlane.xlu1 %670 }
 0x340   : > { %v672_v12 = vsub.f32 %v665_v62, %v671_v11 }
 0x342   : > { %v673_v13 = vmul.f32 1.442695, %v672_v12  ;;  %v642_v14 = vpop.f32.mrf.mxu0 }
 0x344   : > { %1464 = vpow2.f32 %v673_v13 }
 0x34a   : > { %v1465_v15 = vpop.eup %1464  ;;  %v644_v16 = vpop.f32.mrf.mxu0 }
 0x34b   : > { %v675_v17 = vsel %vm508_vm2, %v1465_v15, 0.0 }
 0x34c   : > { %676 = vadd.xlane.f32.xlu1 %v675_v17 }
 0x352   : > { %v744_v18 = vpop.f32.mrf.mxu0 }
 0x353   : > { %v748_v19 = vsel %vm508_vm2, %v744_v18, -inf }
 0x354   : > { %749 = vmax.xlane.f32.xlu0 %v748_v19 }
 0x35a   : > { %v746_v20 = vpop.f32.mrf.mxu0 }
 0x368   : > { %681 = vrot.lane.b32.xlu0 %v1944_v49, %s1738_s28 }
 0x370   : > { %804 = vrot.lane.b32.xlu0 %v1920_v10, %s1741_s12 }
 0x3bb   : > { %v623_v21 = vpop.f32.mrf.mxu3 }
 0x3bc   : > { %v643_v51 = vadd.f32 %v642_v14, %v623_v21 }
 0x3bf   : > { %v677_v26 = vpop.xlane.xlu1 %676 }
 0x3c3   : > { %v625_v22 = vpop.f32.mrf.mxu3 }
 0x3c7   : > { %v750_v23 = vpop.xlane.xlu0 %749 }
 0x3c8   : > { %v751_v24 = vsub.f32 %v744_v18, %v750_v23  ;;  %v941_v18 = vld [vmem:[#allocation10 + $0xa] sm:$0x3] }
 0x3c9   : > { %v946_v21 = vsel %vm610_vm4, %v941_v18, 0 }
 0x3ca   : > { %v752_v25 = vmul.f32 1.442695, %v751_v24 }
 0x3cc   : > { %1466 = vpow2.f32 %v752_v25 }
 0x3cd   : > { %1468 = vrcp.f32 %v677_v26  ;;  %v862_v26 = vld [vmem:[#allocation10 + $0x8] sm:$0x3] }
 0x3d2   : > { %v1467_v27 = vpop.eup %1466 }
 0x3d3   : > { %v754_v28 = vsel %vm508_vm2, %v1467_v27, 0.0  ;;  %v1469_v29 = vpop.eup %1468 }
 0x3d4   : > { %755 = vadd.xlane.f32.xlu1 %v754_v28  ;;  %v679_v31 = vmul.f32 %v1469_v29, %v1465_v15 }
 0x3d6   : > { %v680_v36 = vpack.c.bf16 %v679_v31, %v679_v31 }
 0x3da   : > { %v682_v32 = vpop.permute.xlu0 %681 }
 0x3db   : > { %v687_v34 = vsel %vm524_vm3, %v682_v32, 0 }
 0x3dc   : > { %696 = vmatpush.bf16.msra.mxu2 %v687_v34 }
 0x3df   : > { %1314 = vmatmul.msk.bf16.vlgmr.msra.gmra.mxu2 %vm508_vm2, %v680_v36 }
 0x3e0   : > { %797 = vmatpush.bf16.msrb.mxu2 %v788_v33 }
 0x3e2   : > { %v805_v47 = vpop.permute.xlu0 %804 }
 0x3e4   : > { %900 = vmatpush.bf16.xpose.msra.mxu2 %v891_v37 }
 0x3ed   : > { %760 = vrot.lane.b32.xlu1 %v1944_v49, %s1740_s11  ;;  %s1136_s11 = sshll.u32 %s378_s20, 4  ;;  %s1137_s11 = int_to_ptr.vmem [resolvable:$true] %s1136_s11 }
 0x447   : > { %v756_v38 = vpop.xlane.xlu1 %755 }
 0x448   : > { %1470 = vrcp.f32 %v756_v38 }
 0x44e   : > { %v1471_v39 = vpop.eup %1470 }
 0x44f   : > { %v758_v40 = vmul.f32 %v1471_v39, %v1467_v27  ;;  %v867_v27 = vsel %vm610_vm4, %v862_v26, 0 }
 0x451   : > { %v759_v43 = vpack.c.bf16 %v758_v40, %v758_v40 }
 0x45f   : > { %v761_v41 = vpop.permute.xlu1 %760 }
 0x460   : > { %v766_v42 = vsel %vm524_vm3, %v761_v41, 0 }
 0x461   : > { %775 = vmatpush.bf16.msrb.mxu1 %v766_v42 }
 0x462   : > { %v698_v44 = vpop.f32.mrf.mxu2 }
 0x463   : > { %v702_v45 = vpack.c.bf16 %v698_v44, %v698_v44 }
 0x464   : > { %1317 = vmatmul.msk.bf16.vlgmr.msrb.gmra.mxu1 %vm508_vm2, %v759_v43 }
 0x465   : > { %1315 = vmatmul.msk.bf16.vlgmr.msra.gmra.mxu3 %vm488_vm1, %v702_v45  ;;  %876 = vmatpush.bf16.msra.mxu1 %v867_v27 }
 0x46a   : > { %v700_v46 = vpop.f32.mrf.mxu2 }
 0x475   : > { %1319 = vmatmul.msk.bf16.vlgmr.msrb.gmra.mxu3 %vm488_vm1, %v805_v47 }
 0x4e1   : > { %v777_v48 = vpop.f32.mrf.mxu1 }
 0x4e2   : > { %v781_v50 = vpack.c.bf16 %v777_v48, %v777_v48 }
 0x4e4   : > { %1318 = vmatmul.msk.bf16.vlgmr.msrb.gmra.mxu2 %vm488_vm1, %v781_v50 }
 0x4e8   : > { %v720_v52 = vpop.f32.mrf.mxu3 }
 0x4e9   : > { %v724_v53 = vadd.f32 %v720_v52, %v643_v51  ;;  %v779_v54 = vpop.f32.mrf.mxu1 }
 0x4f0   : > { %v722_v55 = vpop.f32.mrf.mxu3 }
 0x4f4   : > { %1322 = vmatmul.msk.bf16.vlgmr.msra.gmra.mxu2 %vm488_vm1, %v884_v56 }
 0x4f8   : > { %v823_v57 = vpop.f32.mrf.mxu3 }
 0x4f9   : > { %v827_v58 = vsel %vm508_vm2, %v823_v57, -inf }
 0x4fa   : > { %828 = vmax.xlane.f32.xlu0 %v827_v58 }
 0x500   : > { %v825_v59 = vpop.f32.mrf.mxu3 }
 0x567   : > { %v799_v60 = vpop.f32.mrf.mxu2 }
 0x568   : > { %v1984_v61 = vadd.f32 %v799_v60, %v724_v53 }
 0x56d   : > { %v829_v62 = vpop.xlane.xlu0 %828 }
 0x56e   : > { %v830_v63 = vsub.f32 %v823_v57, %v829_v62 }
 0x56f   : > { %v801_v0 = vpop.f32.mrf.mxu2 }
 0x570   : > { %v831_v1 = vmul.f32 1.442695, %v830_v63 }
 0x572   : > { %1472 = vpow2.f32 %v831_v1 }
 0x577   : > { %v902_v2 = vpop.f32.mrf.mxu2 }
 0x578   : > { %v1473_v3 = vpop.eup %1472  ;;  %v906_v4 = vsel %vm508_vm2, %v902_v2, -inf }
 0x579   : > { %907 = vmax.xlane.f32.xlu1 %v906_v4  ;;  %v833_v5 = vsel %vm508_vm2, %v1473_v3, 0.0 }
 0x57a   : > { %834 = vadd.xlane.f32.xlu2 %v833_v5 }
 0x57f   : > { %v904_v6 = vpop.f32.mrf.mxu2 }
 0x592   : > { %839 = vrot.lane.b32.xlu1 %v1944_v49, %s1741_s12  ;;  %918 = vrot.lane.b32.xlu2 %v1944_v49, %s1742_s13  ;;  %s1138_s12 = sshll.u32 %s1134_s8, 4  ;;  %s1139_s12 = int_to_ptr.hbm [resolvable:$true] %s1138_s12 }
 0x593   : > { %s1652_s13 = sshra.s32 %s1139_s12, 4  ;;  %s1653_s13 = int_to_ptr.hbm [resolvable:$true] %s1652_s13 }
 0x594   : > { %p1659_p9 = scmp.lt.s32.totalorder %s1653_s13, %s2081_s6 }
 0x59a   : > { %1043 = vrot.lane.b32.xlu1 %v1912_v8, %s1743_s14  ;;  %1041 = vrot.lane.b32.xlu2 %v1920_v10, %s1743_s14 }
 0x5ec   : > { %v908_v7 = vpop.xlane.xlu1 %907 }
 0x5ed   : > { %v909_v9 = vsub.f32 %v902_v2, %v908_v7  ;;  %v835_v11 = vpop.xlane.xlu2 %834 }
 0x5ef   : > { %v910_v12 = vmul.f32 1.442695, %v909_v9 }
 0x5f1   : > { %1474 = vpow2.f32 %v910_v12 }
 0x5f2   : > { %1476 = vrcp.f32 %v835_v11 }
 0x5f5   : > { %v919_v13 = vpop.permute.xlu2 %918 }
 0x5f6   : > { %v924_v14 = vsel %vm524_vm3, %v919_v13, 0 }
 0x5f7   : > { %v1475_v15 = vpop.eup %1474  ;;  %933 = vmatpush.bf16.msra.mxu3 %v924_v14 }
 0x5f8   : > { %v912_v16 = vsel %vm508_vm2, %v1475_v15, 0.0  ;;  %v1477_v17 = vpop.eup %1476 }
 0x5f9   : > { %913 = vadd.xlane.f32.xlu0 %v912_v16  ;;  %v837_v19 = vmul.f32 %v1477_v17, %v1473_v3  ;;  %v1099_v17 = vld [vmem:[#allocation10 + $0xe] sm:$0x3] }
 0x5fa   : > { %v1104_v18 = vsel %vm610_vm4, %v1099_v17, 0 }
 0x5fb   : > { %v838_v23 = vpack.c.bf16 %v837_v19, %v837_v19 }
 0x5fd   : > { %v1042_v41 = vpop.permute.xlu2 %1041 }
 0x604   : > { %v840_v20 = vpop.permute.xlu1 %839 }
 0x605   : > { %v845_v22 = vsel %vm524_vm3, %v840_v20, 0  ;;  %v1455_v20 = vld [vmem:[%s2080_s5] ss:$0 sm:$0xff] }
 0x606   : > { %854 = vmatpush.bf16.msra.mxu0 %v845_v22  ;;  %391 = vst.msk [vmem:[%s378_s20] sm:$0xff] %vm390_vm0, %v1455_v20 }
 0x609   : > { %1320 = vmatmul.msk.bf16.vlgmr.msra.gmra.mxu0 %vm508_vm2, %v838_v23 }
 0x60a   : > { %955 = vmatpush.bf16.msrb.mxu0 %v946_v21 }
 0x60c   : > { %v1044_v24 = vpop.permute.xlu1 %1043 }
 0x60d   : > { %v1049_v25 = vsel %vm488_vm1, %v1044_v24, 0  ;;  %964 = vrot.lane.b32.xlu0 %v1912_v8, %s1744_s17  ;;  %v1120_v27 = vld [vmem:[%s378_s20] sm:$0xff] }
 0x60e   : > { %1058 = vmatpush.bf16.xpose.msra.mxu0 %v1049_v25 }
 0x615   : > { %962 = vrot.lane.b32.xlu0 %v1920_v10, %s1744_s17 }
 0x66c   : > { %v914_v28 = vpop.xlane.xlu0 %913 }
 0x66d   : > { %1478 = vrcp.f32 %v914_v28 }
 0x673   : > { %v1479_v29 = vpop.eup %1478 }
 0x674   : > { %v916_v30 = vmul.f32 %v1479_v29, %v1475_v15 }
 0x676   : > { %v917_v31 = vpack.c.bf16 %v916_v30, %v916_v30 }
 0x678   : > { %1323 = vmatmul.msk.bf16.vlgmr.msra.gmra.mxu3 %vm508_vm2, %v917_v31 }
 0x67f   : > { %v965_v32 = vpop.permute.xlu0 %964 }
 0x680   : > { %v970_v33 = vsel %vm488_vm1, %v965_v32, 0 }
 0x681   : > { %979 = vmatpush.bf16.xpose.msrb.mxu1 %v970_v33 }
 0x686   : > { %v856_v8 = vpop.f32.mrf.mxu0 }
 0x687   : > { %v860_v34 = vpack.c.bf16 %v856_v8, %v856_v8  ;;  %v963_v35 = vpop.permute.xlu0 %962 }
 0x689   : > { %1321 = vmatmul.msk.bf16.vlgmr.msra.gmra.mxu1 %vm488_vm1, %v860_v34 }
 0x68e   : > { %v858_v10 = vpop.f32.mrf.mxu0 }
 0x699   : > { %1325 = vmatmul.msk.bf16.vlgmr.msrb.gmra.mxu1 %vm488_vm1, %v963_v35 }
 0x6fb   : > { %v935_v36 = vpop.f32.mrf.mxu3 }
 0x6fc   : > { %v939_v37 = vpack.c.bf16 %v935_v36, %v935_v36 }
 0x6fe   : > { %1324 = vmatmul.msk.bf16.vlgmr.msrb.gmra.mxu0 %vm488_vm1, %v939_v37 }
 0x703   : > { %v937_v38 = vpop.f32.mrf.mxu3 }
 0x706   : > { %v878_v39 = vpop.f32.mrf.mxu1 }
 0x707   : > { %v882_v40 = vadd.f32 %v878_v39, %v1984_v61 }
 0x70e   : > { %v880_v42 = vpop.f32.mrf.mxu1  ;;  %1328 = vmatmul.msk.bf16.vlgmr.msra.gmra.mxu0 %vm488_vm1, %v1042_v41 }
 0x716   : > { %v981_v43 = vpop.f32.mrf.mxu1 }
 0x717   : > { %v985_v44 = vsel %vm508_vm2, %v981_v43, -inf }
 0x718   : > { %986 = vmax.xlane.f32.xlu1 %v985_v44 }
 0x71e   : > { %v983_v45 = vpop.f32.mrf.mxu1 }
 0x77b   : > { %v957_v46 = vpop.f32.mrf.mxu0 }
 0x77c   : > { %v961_v47 = vadd.f32 %v957_v46, %v882_v40 }
 0x783   : > { %v959_v48 = vpop.f32.mrf.mxu0 }
 0x78b   : > { %v987_v50 = vpop.xlane.xlu1 %986  ;;  %v1060_v51 = vpop.f32.mrf.mxu0 }
 0x78c   : > { %v988_v52 = vsub.f32 %v981_v43, %v987_v50  ;;  %v1064_v53 = vsel %vm508_vm2, %v1060_v51, -inf }
 0x78d   : > { %1065 = vmax.xlane.f32.xlu0 %v1064_v53 }
 0x78e   : > { %v989_v54 = vmul.f32 1.442695, %v988_v52 }
 0x790   : > { %1480 = vpow2.f32 %v989_v54 }
 0x793   : > { %v1062_v55 = vpop.f32.mrf.mxu0 }
 0x796   : > { %v1481_v56 = vpop.eup %1480 }
 0x797   : > { %v991_v57 = vsel %vm508_vm2, %v1481_v56, 0.0 }
 0x798   : > { %992 = vadd.xlane.f32.xlu2 %v991_v57 }
 0x7a1   : > { %997 = vrot.lane.b32.xlu0 %v1944_v49, %s1744_s17 }
 0x7b0   : > { %1076 = vrot.lane.b32.xlu2 %v1944_v49, %s1743_s14  ;;  %v1020_v49 = vld [vmem:[#allocation10 + $0xc] sm:$0x3]  ;;  %s1654_s14 = scalar_lea.hbm %s1653_s13, 8 }
 0x7b1   : > { %v1025_v7 = vsel %vm610_vm4, %v1020_v49, 0  ;;  %p1655_p1 = scmp.ne.s32.totalorder %s1653_s13, %s1654_s14  ;;  %p1660_p10 = scmp.lt.s32.totalorder %s1658_s18, %s1654_s14 }
 0x7b2   : > { %1034 = vmatpush.bf16.msrb.mxu3 %v1025_v7 }
 0x7b3   : > { %p1656_p3 = pnand %p1655_p1, %p1872_p0  ;;  %p1661_p12 = por %p1660_p10, %p1659_p9 }
 0x7b5   : > { %p1657_p8 = pneg %p1656_p3 }
 0x7b7   : > { %p1662_p13 = pnand %p1661_p12, %p1657_p8 }
 0x800   : > { %v1066_v58 = vpop.xlane.xlu0 %1065 }
 0x801   : > { %v1067_v59 = vsub.f32 %v1060_v51, %v1066_v58 }
 0x803   : > { %v1068_v60 = vmul.f32 1.442695, %v1067_v59 }
 0x805   : > { %1482 = vpow2.f32 %v1068_v60 }
 0x80b   : > { %v1483_v61 = vpop.eup %1482  ;;  %v993_v62 = vpop.xlane.xlu2 %992 }
 0x80c   : > { %1484 = vrcp.f32 %v993_v62  ;;  %v1070_v63 = vsel %vm508_vm2, %v1483_v61, 0.0 }
 0x80d   : > { %1071 = vadd.xlane.f32.xlu1 %v1070_v63 }
 0x812   : > { %v1485_v0 = vpop.eup %1484 }
 0x813   : > { %v995_v1 = vmul.f32 %v1485_v0, %v1481_v56  ;;  %v1077_v2 = vpop.permute.xlu2 %1076  ;;  %v998_v3 = vpop.permute.xlu0 %997 }
 0x814   : > { %v1082_v4 = vsel %vm524_vm3, %v1077_v2, 0  ;;  %v1003_v5 = vsel %vm524_vm3, %v998_v3, 0 }
 0x815   : > { %v996_v6 = vpack.c.bf16 %v995_v1, %v995_v1  ;;  %1012 = vmatpush.bf16.msrb.mxu2 %v1003_v5  ;;  %1091 = vmatpush.bf16.msra.mxu1 %v1082_v4 }
 0x818   : > { %1326 = vmatmul.msk.bf16.vlgmr.msrb.gmra.mxu2 %vm508_vm2, %v996_v6 }
 0x819   : > { %1113 = vmatpush.bf16.msra.mxu2 %v1104_v18 }
 0x880   : > { %v1072_v9 = vpop.xlane.xlu1 %1071 }
 0x881   : > { %1486 = vrcp.f32 %v1072_v9 }
 0x887   : > { %v1487_v11 = vpop.eup %1486 }
 0x888   : > { %v1074_v12 = vmul.f32 %v1487_v11, %v1483_v61 }
 0x88a   : > { %v1075_v13 = vpack.c.bf16 %v1074_v12, %v1074_v12 }
 0x88c   : > { %1329 = vmatmul.msk.bf16.vlgmr.msra.gmra.mxu1 %vm508_vm2, %v1075_v13 }
 0x89b   : > { %v1014_v14 = vpop.f32.mrf.mxu2 }
 0x89c   : > { %v1018_v15 = vpack.c.bf16 %v1014_v14, %v1014_v14 }
 0x89e   : > { %1327 = vmatmul.msk.bf16.vlgmr.msrb.gmra.mxu3 %vm488_vm1, %v1018_v15 }
 0x8a3   : > { %v1016_v16 = vpop.f32.mrf.mxu2 }
 0x909   : > { %v1093_v19 = vpop.f32.mrf.mxu1 }
 0x90a   : > { %v1097_v21 = vpack.c.bf16 %v1093_v19, %v1093_v19 }
 0x90c   : > { %1330 = vmatmul.msk.bf16.vlgmr.msra.gmra.mxu2 %vm488_vm1, %v1097_v21 }
 0x911   : > { %v1095_v22 = vpop.f32.mrf.mxu1 }
 0x921   : > { %v1036_v23 = vpop.f32.mrf.mxu3 }
 0x922   : > { %v1040_v24 = vadd.f32 %v1036_v23, %v961_v47 }
 0x929   : > { %v1038_v25 = vpop.f32.mrf.mxu3 }
 0x98f   : > { %v1115_v26 = vpop.f32.mrf.mxu2 }
 0x990   : > { %v1119_v28 = vadd.f32 %v1115_v26, %v1040_v24 }
 0x992   : > { %v1121_v29 = vadd.f32 %v1120_v27, %v1119_v28 }
 0x994   : > { %1122 = vst.msk [vmem:[%s378_s20] sm:$0xff] %vm390_vm0, %v1121_v29 }
 0x995   : > { %1665 = shalt.err (!%p1662_p13)
}
 0x996   : > { %1359 = dma.vmem_to_hbm [thread:$0]  (%p1872_p0), %s1137_s11, 128, %s1139_s12, %s1124_s10  }
 0x997   : > { %v1117_v30 = vpop.f32.mrf.mxu2 }
 0x998 PF: > { %s1150_s30 = sand.u32 1, %s1708_s21   ;;  %p1379_p2 = pnand %p1270_p6, %p1879_p5 }
 0x999   : > { %s1151_s20 = scalar_lea.sflag [#allocation4], %s1150_s30 }
 0x99a   : > { %p1380_p4 = pneg %p1379_p2 }
 0x99c   : > { %1703 = dma.done.wait (%p1380_p4), %s1151_s20, 128  }
 0x99d   : > { %1705 = vsyncadd (%p1380_p4), %s1151_s20, 4294967168  ;;  %s24_s26 = sadd.s32 1, %s1728_s26   ;;  %s2088_s21 = smov %s1712_s22 }
 0x99e   : > { %p21_p7 = scmp.ge.s32.totalorder %s24_s26, 4   ;;  %s2089_s22 = smov %s1716_s23 }
 0x99f   : > { %s2090_s23 = smov %s1877_s29  ;;  %s2091_s24 = smov %s1724_s25 }
 0x9a0   : > { %s2092_s25 = smov %s2094_s19  ;;  %23 = sbr.rel (!%p21_p7) target bundleno = 8 (0x8), region = 120 }
 0x9a5   :  { %1157 = vsyncpa [#allocation3], 1 }
 0x9a6   :  { %1159 = vsyncpa [#allocation3 + $0x1], 1 }
 0x9a7   :  { %1160 = vsyncpa [#allocation6], 1 }
 0x9a8   :  { %1161 = vsyncpa [#allocation9], 1 }
 0x9a9   :  { %1162 = vsyncpa [#allocation4], 1 }
 0x9aa   :  { %1164 = vsyncpa [#allocation4 + $0x1], 1 }

</bundles_post_ra>
